<compile_context>
chip_gen: v7x
topology: tpu7x:2x2x1
jax: 0.10.0
libtpu: 0.0.40
codegen_flags: <defaults>
</compile_context>

<pallas_src>
import functools
import math

import jax
import jax.numpy as jnp
from jax.experimental import pallas as pl
from jax.experimental.pallas import tpu as pltpu


def make_positional_encoding_table(d_model: int, max_len: int = 17000) -> jnp.ndarray:
    """Glue: replicates the buffer built in PositionalEncoding.__init__."""
    position = jnp.arange(max_len, dtype=jnp.float32)[:, None]            # (max_len, 1)
    div_term = jnp.exp(
        jnp.arange(0, d_model, 2, dtype=jnp.float32) * (-math.log(10000.0) / d_model)
    )                                                                     # (d_model/2,)
    pe = jnp.zeros((max_len, d_model), dtype=jnp.float32)
    pe = pe.at[:, 0::2].set(jnp.sin(position * div_term))
    pe = pe.at[:, 1::2].set(jnp.cos(position * div_term))
    return pe


# ----------------------------------------------------------------------------
# Kernels
# ----------------------------------------------------------------------------

def _pe_add_kernel(x_ref, pe_ref, o_ref):
    # eval mode: plain elementwise add (HBM-streaming, VPU only)
    o_ref[...] = (x_ref[...] + pe_ref[...].astype(x_ref.dtype)).astype(o_ref.dtype)


def _pe_add_dropout_kernel(x_ref, pe_ref, u_ref, o_ref, *, p):
    # training mode: add + dropout (keep w.p. 1-p, scale kept values by 1/(1-p))
    y = x_ref[...] + pe_ref[...].astype(x_ref.dtype)
    keep = u_ref[...] >= jnp.float32(p)
    scale = jnp.float32(1.0 / (1.0 - p))
    o_ref[...] = jnp.where(keep, y * scale, jnp.zeros_like(y)).astype(o_ref.dtype)


# ----------------------------------------------------------------------------
# Wrapper
# ----------------------------------------------------------------------------

def _choose_tile_s(S: int, D: int, itemsize: int, target_bytes: int = 2 << 20) -> int:
    """Largest sublane-aligned row tile whose per-operand tile is ~target_bytes."""
    align = 8 if itemsize >= 4 else 16          # bf16 packs 16 rows per vreg
    if S <= align:
        return S                                 # single full block (tiny sequences)
    rows = max(align, target_bytes // max(1, D * itemsize))
    rows = (rows // align) * align
    return int(min(rows, (S // align) * align))  # cdiv grid handles the tail


def positional_encoding_forward(
    x: jnp.ndarray,
    pe: jnp.ndarray,
    *,
    p: float = 0.1,
    training: bool = True,
    rng_key=None,
    tile_s: int | None = None,
) -> jnp.ndarray:
    """x: (S, D).  Returns dropout(x + pe[:S])."""
    S, D = x.shape
    max_len, d_model = pe.shape
    if d_model != D:
        raise ValueError(f"d_model mismatch: x has {D}, pe has {d_model}")
    if S > max_len:
        raise ValueError(f"sequence length {S} exceeds pe max_len {max_len}")

    itemsize = jnp.dtype(x.dtype).itemsize
    if tile_s is None:
        tile_s = _choose_tile_s(S, D, itemsize)

    grid = (pl.cdiv(S, tile_s),)
    block = (tile_s, D)
    idx = lambda i: (i, 0)

    # Pass the full pe table when the row tile is sublane-aligned (no slice
    # copy); fall back to a tiny pe[:S] slice only for very short sequences.
    if tile_s % 8 == 0:
        pe_in = pe
    else:
        pe_in = pe[:S]

    compiler_params = pltpu.CompilerParams(
        dimension_semantics=("parallel",),       # lets v7x shard over both TCs
        vmem_limit_bytes=48 * 1024 * 1024,       # fits v5e/v6e/v7x physical VMEM
    )

    apply_dropout = training and p > 0.0
    if not apply_dropout:
        return pl.pallas_call(
            _pe_add_kernel,
            out_shape=jax.ShapeDtypeStruct((S, D), x.dtype),
            grid=grid,
            in_specs=[pl.BlockSpec(block, idx), pl.BlockSpec(block, idx)],
            out_specs=pl.BlockSpec(block, idx),
            compiler_params=compiler_params,
        )(x, pe_in)

    if rng_key is None:
        rng_key = jax.random.PRNGKey(0)
    # Dropout randomness generated outside the kernel (distribution matches
    # torch's dropout; the exact torch RNG stream cannot be reproduced).
    u = jax.random.uniform(rng_key, (S, D), dtype=jnp.float32)

    kernel = functools.partial(_pe_add_dropout_kernel, p=float(p))
    return pl.pallas_call(
        kernel,
        out_shape=jax.ShapeDtypeStruct((S, D), x.dtype),
        grid=grid,
        in_specs=[
            pl.BlockSpec(block, idx),   # x tile
            pl.BlockSpec(block, idx),   # pe tile (row-block of the full table)
            pl.BlockSpec(block, idx),   # uniform randoms tile
        ],
        out_specs=pl.BlockSpec(block, idx),
        compiler_params=compiler_params,
    )(x, pe_in, u)


if __name__ == "__main__":
    key = jax.random.PRNGKey(0)
    S, D = 16, 32  # small shapes: seq=16, d_model=32
    x = jax.random.normal(key, (S, D), dtype=jnp.float32)

    pe = make_positional_encoding_table(D, max_len=17000)
    ref = x + pe[:S]

    # eval-mode (no dropout) exact check against pure-JAX reference
    out_eval = positional_encoding_forward(x, pe, p=0.1, training=False)
    jax.block_until_ready(out_eval)
    assert out_eval.shape == (S, D)
    assert jnp.allclose(out_eval, ref, atol=1e-6), "eval-mode mismatch"

    # training-mode forward (default module behaviour): dropout applied
    p = 0.1
    out_train = positional_encoding_forward(
        x, pe, p=p, training=True, rng_key=jax.random.PRNGKey(1)
    )
    jax.block_until_ready(out_train)
    assert out_train.shape == (S, D)
    # every surviving element must equal ref / (1 - p)
    kept = out_train != 0
    err = jnp.where(kept, out_train - ref / (1.0 - p), 0.0)
    assert jnp.max(jnp.abs(err)) < 1e-5, "training-mode kept values mismatch"

    print("KERNEL_OK")
</pallas_src>

<mosaic_0001>
module attributes {stable_mosaic.version = 11 : i64} {
  func.func @_pe_add_kernel(%arg0: i32, %arg1: memref<16x32xf32, #tpu.memory_space<vmem>>, %arg2: memref<16x32xf32, #tpu.memory_space<vmem>>, %arg3: memref<16x32xf32, #tpu.memory_space<vmem>>) attributes {dimension_semantics = [#tpu.dimension_semantics<parallel>], iteration_bounds = array<i64: 1>, scalar_prefetch = 0 : i64, scratch_operands = 0 : i64, tpu.core_type = #tpu.core_type<tc>, window_params = [{transform_indices = @transform_0, window_bounds = array<i64: 16, 32>}, {transform_indices = @transform_1, window_bounds = array<i64: 16, 32>}, {transform_indices = @transform_2, window_bounds = array<i64: 16, 32>}]} {
    %c0 = arith.constant 0 : index
    %c0_0 = arith.constant 0 : index
    %0 = vector.load %arg1[%c0, %c0_0] : memref<16x32xf32, #tpu.memory_space<vmem>>, vector<16x32xf32>
    %c0_1 = arith.constant 0 : index
    %c0_2 = arith.constant 0 : index
    %1 = vector.load %arg2[%c0_1, %c0_2] : memref<16x32xf32, #tpu.memory_space<vmem>>, vector<16x32xf32>
    %2 = arith.addf %0, %1 : vector<16x32xf32>
    %c0_3 = arith.constant 0 : index
    %c0_4 = arith.constant 0 : index
    %3 = vector.load %arg3[%c0_3, %c0_4] : memref<16x32xf32, #tpu.memory_space<vmem>>, vector<16x32xf32>
    tpu.vector_store %arg3[%c0_3, %c0_4], %2 {strides = array<i32>} : memref<16x32xf32, #tpu.memory_space<vmem>>, vector<16x32xf32>,
    return
  }
  func.func @transform_0(%arg0: i32) -> (i32, i32) {
    %c0_i32 = arith.constant 0 : i32
    %c0_i32_0 = arith.constant 0 : i32
    return %arg0, %c0_i32 : i32, i32
  }
  func.func @transform_1(%arg0: i32) -> (i32, i32) {
    %c0_i32 = arith.constant 0 : i32
    %c0_i32_0 = arith.constant 0 : i32
    return %arg0, %c0_i32 : i32, i32
  }
  func.func @transform_2(%arg0: i32) -> (i32, i32) {
    %c0_i32 = arith.constant 0 : i32
    %c0_i32_0 = arith.constant 0 : i32
    return %arg0, %c0_i32 : i32, i32
  }
}

</mosaic_0001>

<bundles_post_ra>
// kernel: tpu_custom_call.1
= control target key start
LH: loop header
LB: loop body
LE: loop exit
PB: predicated region body
PF: predicated region fallthrough
CT: control target
= control target key end

     0   :  { %vm18_vm0 = vcmask 261120   ;;  %s106_s0 = inlined_call_operand.vmem [shape: f32[16,32], index: 0, kind: input, shape index: {}]   ;;  %s107_s1 = inlined_call_operand.vmem [shape: f32[17000,32], index: 1, kind: input, shape index: {}]   ;;  %s108_s2 = inlined_call_operand.hbm [shape: f32[16,32], index: 2, kind: output, shape index: {}]  }
   0x1   :  { %v12_v0 = vld [vmem:[%s106_s0] sm:$0xff]  ;;  %v13_v2 = vld [vmem:[%s106_s0 + $0x8] sm:$0xff] }
   0x2   :  { %v14_v1 = vld [vmem:[%s107_s1] sm:$0xff]  ;;  %v15_v4 = vld [vmem:[%s107_s1 + $0x8] sm:$0xff] }
   0x3   :  { %v16_v3 = vadd.f32 %v14_v1, %v12_v0 }
   0x4   :  { %7 = vsyncpa [#allocation3], 0  ;;  %s64_s17 = smov [#allocation2]   ;;  %v17_v5 = vadd.f32 %v15_v4, %v13_v2 }
   0x5   :  { %s26_s18 = sshll.u32 %s64_s17, 4  ;;  %19 = vst.msk [vmem:[#allocation2] sm:$0xff] %vm18_vm0, %v16_v3  ;;  %s27_s18 = int_to_ptr.vmem [resolvable:$true] %s26_s18 }
   0x6   :  { %20 = vst.msk [vmem:[#allocation2 + $0x8] sm:$0xff] %vm18_vm0, %v17_v5  ;;  %s40_s19 = scalar_lea.vmem %s27_s18, 256  ;;  %p45_p1 = scmp.lt.s32.totalorder %s27_s18, %s27_s18 }
   0x7   :  { %p41_p0 = scmp.ne.s32.totalorder %s27_s18, %s40_s19  ;;  %p46_p2 = scmp.lt.s32.totalorder %s40_s19, %s40_s19 }
   0x9   :  { %p47_p3 = por %p46_p2, %p45_p1 }
   0xb   :  { %p48_p4 = pnand %p47_p3, %p41_p0 }
   0xd   :  { %51 = shalt.err (!%p48_p4)
}
   0xe   :  { %s52_s21 = scalar_lea.hbm %s108_s2, 256 }
   0xf   :  { %p53_p5 = scmp.ne.s32.totalorder %s108_s2, %s52_s21  ;;  %p56_p6 = scmp.lt.u32.totalorder %s52_s21, %s108_s2 }
  0x11   :  { %p58_p7 = pnand %p56_p6, %p53_p5 }
  0x13   :  { %61 = shalt.err (!%p58_p7)
}
  0x14   :  { %s65_s25 = smov 128   ;;  %s66_s26 = smov 8  }
  0x15   :  { %32 = dma.vmem_to_hbm [thread:$0]  %s27_s18, 256, %s108_s2, [#allocation3], %s65_s25, %s65_s25, %s66_s26  }
  0x16   :  { %62 = dma.done.wait [#allocation3], 256  }
  0x17   :  { %63 = vsyncadd [#allocation3], 4294967040 }
  0x18   :  { %36 = vsyncpa [#allocation3], 1 }

</bundles_post_ra>
